<compile_context>
chip_gen: v6e
topology: v6e:2x2x1
jax: 0.10.0
libtpu: 0.0.40
codegen_flags: <defaults>
</compile_context>

<pallas_src>
import functools

import jax
import jax.numpy as jnp
from jax.experimental import pallas as pl
from jax.experimental.pallas import tpu as pltpu


def _round_up(x, m):
    return (x + m - 1) // m * m


def _conv_conv_bn_kernel(patches_ref, w1t_ref, w2t_ref, gamma_ref, beta_ref,
                         o_ref, *, inv_count, eps):
    """One fused step: KxK conv (im2col matmul) -> 1x1 conv -> BatchNorm.

    patches_ref : (Kp, NMp)    im2col slab; lanes = batch*spatial (lane dense)
    w1t_ref     : (C_in, Kp)   flattened KxK conv weight
    w2t_ref     : (C_out, C_in) 1x1 conv weight
    gamma/beta  : (C_out, 1)
    o_ref       : (C_out, NMp) channel-major, lane-dense output
    """
    p = patches_ref[...]                                          # (Kp, NMp)

    # KxK conv:  (C_in, Kp) . (Kp, NMp) -> (C_in, NMp)
    mid = jax.lax.dot_general(
        w1t_ref[...], p,
        dimension_numbers=(((1,), (0,)), ((), ())),
        preferred_element_type=jnp.float32)

    # 1x1 conv:  (C_out, C_in) . (C_in, NMp) -> (C_out, NMp)
    y = jax.lax.dot_general(
        w2t_ref[...], mid,
        dimension_numbers=(((1,), (0,)), ((), ())),
        preferred_element_type=jnp.float32)

    # BatchNorm2d training-mode stats, computed while y is hot in vregs.
    # Padded lane columns are exactly zero (zero-padded patches), so plain
    # sums are correct; divide by the true element count N*H'*W'.
    mean = jnp.sum(y, axis=1, keepdims=True) * inv_count          # (C_out, 1)
    ex2 = jnp.sum(y * y, axis=1, keepdims=True) * inv_count
    var = jnp.maximum(ex2 - mean * mean, 0.0)                     # biased var
    scale = jax.lax.rsqrt(var + eps) * gamma_ref[...]
    o_ref[...] = (y - mean) * scale + beta_ref[...]


def dw_convolution_forward(x_nchw, w1_oihw, w2_oihw, gamma, beta,
                           *, stride, padding, eps=1e-5):
    """Forward pass. x_nchw: (N, C_in, H, W) f32 -> (N, C_out, H', W') f32."""
    n, c_in, h, w = x_nchw.shape
    c_mid, c_in2, kh_sz, kw_sz = w1_oihw.shape
    assert c_mid == c_in and c_in2 == c_in
    c_out = w2_oihw.shape[0]

    # ---- XLA glue: spatial zero pad + im2col (layout plumbing only).
    xp = jnp.pad(x_nchw, ((0, 0), (0, 0),
                          (padding, padding), (padding, padding)))
    hp, wp = h + 2 * padding, w + 2 * padding
    h_out = (hp - kh_sz) // stride + 1
    w_out = (wp - kw_sz) // stride + 1
    m = h_out * w_out
    nm = n * m
    kprime = kh_sz * kw_sz * c_in

    taps = []
    for kh in range(kh_sz):
        lim_h = kh + stride * (h_out - 1) + 1
        for kw in range(kw_sz):
            lim_w = kw + stride * (w_out - 1) + 1
            taps.append(xp[:, :, kh:lim_h:stride, kw:lim_w:stride])
    patches = jnp.stack(taps, axis=0)                   # (T, N, C_in, H', W')
    patches = patches.transpose(0, 2, 1, 3, 4).reshape(kprime, nm)

    # Flattened weights: rows tap-major / channel-minor, matching the slab.
    w1t = w1_oihw.transpose(0, 2, 3, 1).reshape(c_in, kprime)   # (C_in, K')
    w2t = w2_oihw[:, :, 0, 0]                                   # (C_out, C_in)

    # Layout-friendly padding: sublane multiple of 8, lane multiple of 128.
    kp = _round_up(kprime, 8)
    nmp = _round_up(nm, 128)
    patches = jnp.pad(patches, ((0, kp - kprime), (0, nmp - nm)))
    w1t = jnp.pad(w1t, ((0, 0), (0, kp - kprime)))

    kernel = functools.partial(_conv_conv_bn_kernel,
                               inv_count=1.0 / nm, eps=eps)

    y = pl.pallas_call(
        kernel,
        out_shape=jax.ShapeDtypeStruct((c_out, nmp), jnp.float32),
        grid=(1,),
        in_specs=[
            pl.BlockSpec((kp, nmp), lambda i: (0, 0)),      # im2col slab
            pl.BlockSpec((c_in, kp), lambda i: (0, 0)),     # KxK weight
            pl.BlockSpec((c_out, c_in), lambda i: (0, 0)),  # 1x1 weight
            pl.BlockSpec((c_out, 1), lambda i: (0, 0)),     # gamma
            pl.BlockSpec((c_out, 1), lambda i: (0, 0)),     # beta
        ],
        out_specs=pl.BlockSpec((c_out, nmp), lambda i: (0, 0)),
        compiler_params=pltpu.CompilerParams(
            dimension_semantics=("arbitrary",)),
    )(patches, w1t, w2t, gamma.reshape(c_out, 1), beta.reshape(c_out, 1))

    # (C_out, N*M) -> (N, C_out, H', W'): drop lane padding + tiny XLA
    # transpose/reshape (layout plumbing).
    y = y[:, :nm].reshape(c_out, n, m).transpose(1, 0, 2)
    return y.reshape(n, c_out, h_out, w_out)


def _reference(x, w1_oihw, w2_oihw, gamma, beta, *, stride, padding, eps=1e-5):
    """Pure-JAX reference matching the PyTorch module (training-mode BN)."""
    dn = ('NCHW', 'OIHW', 'NCHW')
    y = jax.lax.conv_general_dilated(
        x, w1_oihw, window_strides=(stride, stride),
        padding=((padding, padding), (padding, padding)),
        dimension_numbers=dn, precision=jax.lax.Precision.HIGHEST)
    y = jax.lax.conv_general_dilated(
        y, w2_oihw, window_strides=(1, 1), padding='VALID',
        dimension_numbers=dn, precision=jax.lax.Precision.HIGHEST)
    mean = jnp.mean(y, axis=(0, 2, 3), keepdims=True)
    var = jnp.mean((y - mean) ** 2, axis=(0, 2, 3), keepdims=True)
    yhat = (y - mean) * jax.lax.rsqrt(var + eps)
    return yhat * gamma.reshape(1, -1, 1, 1) + beta.reshape(1, -1, 1, 1)


if __name__ == "__main__":
    # Small shapes consistent with the module's forward (NCHW input).
    N, C_IN, C_OUT, H, W = 2, 8, 16, 16, 16
    KERNEL = 3

    key = jax.random.PRNGKey(0)
    kx, kw1, kw2, kg, kb = jax.random.split(key, 5)

    x = jax.random.normal(kx, (N, C_IN, H, W), dtype=jnp.float32)

    # Synthetic parameters matching the module's __init__ shapes:
    #   conv1: (C_in, C_in, K, K), conv2: (C_out, C_in, 1, 1), BN affine.
    w1_oihw = jax.random.normal(kw1, (C_IN, C_IN, KERNEL, KERNEL),
                                dtype=jnp.float32) * 0.1
    w2_oihw = jax.random.normal(kw2, (C_OUT, C_IN, 1, 1),
                                dtype=jnp.float32) * 0.1
    gamma = 1.0 + 0.1 * jax.random.normal(kg, (C_OUT,), dtype=jnp.float32)
    beta = 0.1 * jax.random.normal(kb, (C_OUT,), dtype=jnp.float32)

    # Exercise both stride=1 and stride=2 paths.
    for stride, padding in ((1, 1), (2, 1)):
        out = dw_convolution_forward(x, w1_oihw, w2_oihw, gamma, beta,
                                     stride=stride, padding=padding)
        out = jax.block_until_ready(out)
        h_out = (H + 2 * padding - KERNEL) // stride + 1
        w_out = (W + 2 * padding - KERNEL) // stride + 1
        assert out.shape == (N, C_OUT, h_out, w_out), out.shape

        ref = _reference(x, w1_oihw, w2_oihw, gamma, beta,
                         stride=stride, padding=padding)
        max_err = float(jnp.max(jnp.abs(out - ref)))
        assert max_err < 1e-2, (
            f"stride={stride}: max abs error vs reference: {max_err}")

    print("KERNEL_OK")
</pallas_src>

<mosaic_0001>
module attributes {stable_mosaic.version = 11 : i64} {
  func.func @_conv_conv_bn_kernel(%arg0: i32, %arg1: memref<72x512xf32, #tpu.memory_space<vmem>>, %arg2: memref<8x72xf32, #tpu.memory_space<vmem>>, %arg3: memref<16x8xf32, #tpu.memory_space<vmem>>, %arg4: memref<16x1xf32, #tpu.memory_space<vmem>>, %arg5: memref<16x1xf32, #tpu.memory_space<vmem>>, %arg6: memref<16x512xf32, #tpu.memory_space<vmem>>) attributes {dimension_semantics = [#tpu.dimension_semantics<arbitrary>], iteration_bounds = array<i64: 1>, scalar_prefetch = 0 : i64, scratch_operands = 0 : i64, tpu.core_type = #tpu.core_type<tc>, window_params = [{pipeline_mode = #tpu.pipeline_mode<synchronous>, transform_indices = @transform_0, window_bounds = array<i64: 72, 512>}, {pipeline_mode = #tpu.pipeline_mode<synchronous>, transform_indices = @transform_1, window_bounds = array<i64: 8, 72>}, {pipeline_mode = #tpu.pipeline_mode<synchronous>, transform_indices = @transform_2, window_bounds = array<i64: 16, 8>}, {pipeline_mode = #tpu.pipeline_mode<synchronous>, transform_indices = @transform_3, window_bounds = array<i64: 16, 1>}, {pipeline_mode = #tpu.pipeline_mode<synchronous>, transform_indices = @transform_4, window_bounds = array<i64: 16, 1>}, {pipeline_mode = #tpu.pipeline_mode<synchronous>, transform_indices = @transform_5, window_bounds = array<i64: 16, 512>}]} {
    %c0 = arith.constant 0 : index
    %c0_0 = arith.constant 0 : index
    %0 = vector.load %arg1[%c0, %c0_0] : memref<72x512xf32, #tpu.memory_space<vmem>>, vector<72x512xf32>
    %c0_1 = arith.constant 0 : index
    %c0_2 = arith.constant 0 : index
    %1 = vector.load %arg2[%c0_1, %c0_2] : memref<8x72xf32, #tpu.memory_space<vmem>>, vector<8x72xf32>
    %cst = arith.constant dense<0.000000e+00> : vector<8x512xf32>
    %2 = tpu.matmul %1, %0, %cst {dimension_numbers = #tpu.dot_dimension_numbers<[1], [0], [0], [1], [0, 0, 1, 1], [], []>} : vector<8x72xf32>, vector<72x512xf32>, vector<8x512xf32> -> vector<8x512xf32>
    %c0_3 = arith.constant 0 : index
    %c0_4 = arith.constant 0 : index
    %3 = vector.load %arg3[%c0_3, %c0_4] : memref<16x8xf32, #tpu.memory_space<vmem>>, vector<16x8xf32>
    %cst_5 = arith.constant dense<0.000000e+00> : vector<16x512xf32>
    %4 = tpu.matmul %3, %2, %cst_5 {dimension_numbers = #tpu.dot_dimension_numbers<[1], [0], [0], [1], [0, 0, 1, 1], [], []>} : vector<16x8xf32>, vector<8x512xf32>, vector<16x512xf32> -> vector<16x512xf32>
    %cst_6 = arith.constant dense<0.000000e+00> : vector<16xf32>
    %5 = vector.multi_reduction <add>, %4, %cst_6 [1] : vector<16x512xf32> to vector<16xf32>
    %6 = vector.shape_cast %5 : vector<16xf32> to vector<16x1xf32>
    %cst_7 = arith.constant 0.001953125 : f32
    %7 = vector.broadcast %cst_7 : f32 to vector<16x1xf32>
    %8 = arith.mulf %6, %7 : vector<16x1xf32>
    %9 = arith.mulf %4, %4 : vector<16x512xf32>
    %cst_8 = arith.constant dense<0.000000e+00> : vector<16xf32>
    %10 = vector.multi_reduction <add>, %9, %cst_8 [1] : vector<16x512xf32> to vector<16xf32>
    %11 = vector.shape_cast %10 : vector<16xf32> to vector<16x1xf32>
    %cst_9 = arith.constant 0.001953125 : f32
    %12 = vector.broadcast %cst_9 : f32 to vector<16x1xf32>
    %13 = arith.mulf %11, %12 : vector<16x1xf32>
    %14 = arith.mulf %8, %8 : vector<16x1xf32>
    %15 = arith.subf %13, %14 : vector<16x1xf32>
    %cst_10 = arith.constant 0.000000e+00 : f32
    %16 = vector.broadcast %cst_10 : f32 to vector<16x1xf32>
    %17 = arith.maximumf %15, %16 : vector<16x1xf32>
    %cst_11 = arith.constant 9.99999974E-6 : f32
    %18 = vector.broadcast %cst_11 : f32 to vector<16x1xf32>
    %19 = arith.addf %17, %18 : vector<16x1xf32>
    %20 = math.rsqrt %19 : vector<16x1xf32>
    %c0_12 = arith.constant 0 : index
    %c0_13 = arith.constant 0 : index
    %21 = vector.load %arg4[%c0_12, %c0_13] : memref<16x1xf32, #tpu.memory_space<vmem>>, vector<16x1xf32>
    %22 = arith.mulf %20, %21 : vector<16x1xf32>
    %23 = vector.broadcast %8 : vector<16x1xf32> to vector<16x512xf32>
    %24 = arith.subf %4, %23 : vector<16x512xf32>
    %25 = vector.broadcast %22 : vector<16x1xf32> to vector<16x512xf32>
    %26 = arith.mulf %24, %25 : vector<16x512xf32>
    %c0_14 = arith.constant 0 : index
    %c0_15 = arith.constant 0 : index
    %27 = vector.load %arg5[%c0_14, %c0_15] : memref<16x1xf32, #tpu.memory_space<vmem>>, vector<16x1xf32>
    %28 = vector.broadcast %27 : vector<16x1xf32> to vector<16x512xf32>
    %29 = arith.addf %26, %28 : vector<16x512xf32>
    %c0_16 = arith.constant 0 : index
    %c0_17 = arith.constant 0 : index
    %30 = vector.load %arg6[%c0_16, %c0_17] : memref<16x512xf32, #tpu.memory_space<vmem>>, vector<16x512xf32>
    tpu.vector_store %arg6[%c0_16, %c0_17], %29 {strides = array<i32>} : memref<16x512xf32, #tpu.memory_space<vmem>>, vector<16x512xf32>,
    return
  }
  func.func @transform_0(%arg0: i32) -> (i32, i32) {
    %c0_i32 = arith.constant 0 : i32
    %c0_i32_0 = arith.constant 0 : i32
    %c0_i32_1 = arith.constant 0 : i32
    return %c0_i32, %c0_i32_0 : i32, i32
  }
  func.func @transform_1(%arg0: i32) -> (i32, i32) {
    %c0_i32 = arith.constant 0 : i32
    %c0_i32_0 = arith.constant 0 : i32
    %c0_i32_1 = arith.constant 0 : i32
    return %c0_i32, %c0_i32_0 : i32, i32
  }
  func.func @transform_2(%arg0: i32) -> (i32, i32) {
    %c0_i32 = arith.constant 0 : i32
    %c0_i32_0 = arith.constant 0 : i32
    %c0_i32_1 = arith.constant 0 : i32
    return %c0_i32, %c0_i32_0 : i32, i32
  }
  func.func @transform_3(%arg0: i32) -> (i32, i32) {
    %c0_i32 = arith.constant 0 : i32
    %c0_i32_0 = arith.constant 0 : i32
    %c0_i32_1 = arith.constant 0 : i32
    return %c0_i32, %c0_i32_0 : i32, i32
  }
  func.func @transform_4(%arg0: i32) -> (i32, i32) {
    %c0_i32 = arith.constant 0 : i32
    %c0_i32_0 = arith.constant 0 : i32
    %c0_i32_1 = arith.constant 0 : i32
    return %c0_i32, %c0_i32_0 : i32, i32
  }
  func.func @transform_5(%arg0: i32) -> (i32, i32) {
    %c0_i32 = arith.constant 0 : i32
    %c0_i32_0 = arith.constant 0 : i32
    %c0_i32_1 = arith.constant 0 : i32
    return %c0_i32, %c0_i32_0 : i32, i32
  }
}

</mosaic_0001>

<bundles_post_ra>
// kernel: tpu_custom_call.1
= control target key start
LH: loop header
LB: loop body
LE: loop exit
PB: predicated region body
PF: predicated region fallthrough
CT: control target
= control target key end

     0   :  { %10 = vsyncpa [#allocation3], 0  ;;  %s683_s0 = inlined_call_operand.hbm [shape: f32[72,512], index: 0, kind: input, shape index: {}]   ;;  %s684_s1 = inlined_call_operand.vmem [shape: f32[8,72], index: 1, kind: input, shape index: {}]   ;;  %s685_s2 = inlined_call_operand.vmem [shape: f32[16,8], index: 2, kind: input, shape index: {}]   ;;  %s686_s3 = inlined_call_operand.vmem [shape: f32[16,1], index: 3, kind: input, shape index: {}]   ;;  %s687_s4 = inlined_call_operand.vmem [shape: f32[16,1], index: 4, kind: input, shape index: {}]   ;;  %s688_s5 = inlined_call_operand.hbm [shape: f32[16,512], index: 5, kind: output, shape index: {}]  }
   0x1   :  { %11 = vsyncpa [#allocation4], 0  ;;  %s560_s18 = smov [#allocation2]  }
   0x2   :  { %s17_s19 = sshll.u32 %s560_s18, 4  ;;  %s18_s19 = int_to_ptr.vmem [resolvable:$true] %s17_s19 }
   0x3   :  { %s524_s20 = scalar_lea.vmem %s18_s19, 4608  ;;  %p529_p1 = scmp.lt.s32.totalorder %s18_s19, %s18_s19 }
   0x4   :  { %p525_p0 = scmp.ne.s32.totalorder %s18_s19, %s524_s20  ;;  %p530_p2 = scmp.lt.s32.totalorder %s524_s20, %s524_s20 }
   0x6   :  { %p531_p3 = por %p530_p2, %p529_p1 }
   0x8   :  { %p532_p4 = pnand %p531_p3, %p525_p0 }
   0xa   :  { %535 = shalt.err (!%p532_p4)
}
   0xb   :  { %s561_s21 = smov 512   ;;  %s562_s22 = smov 32  }
   0xc   :  { %23 = dma.hbm_to_vmem [thread:$0]  %s683_s0, 4608, %s18_s19, [#allocation3], %s561_s21, %s561_s21, %s562_s22  }
   0xd   :  { %556 = dma.done.wait [#allocation3], 4608  }
   0xe   :  { %557 = vsyncadd [#allocation3], 4294962688  ;;  %v563_v0 = vmov 0.0   ;;  %v68_v1 = vld [vmem:[#allocation2 + $0x108] sm:$0xff]  ;;  %v67_v2 = vld [vmem:[#allocation2 + $0x100] sm:$0xff]  ;;  %vm72_vm0 = vcmask 588800  }
   0xf   :  { %140 = vmatprep.mubr.f32.mxu0 %v563_v0  ;;  %211 = vmatprep.mubr.f32.mxu1 %v563_v0  ;;  %v70_v3 = vld [vmem:[#allocation2 + $0x118] sm:$0xff]  ;;  %v64_v4 = vld [vmem:[#allocation2 + $0xe8] sm:$0xff]  ;;  %v69_v5 = vld [vmem:[#allocation2 + $0x110] sm:$0xff]  ;;  %vm220_vm1 = vcmask 64512  }
  0x10   :  { %90 = vmatprep.subr.mxu0 %v68_v1  ;;  %161 = vmatprep.subr.mxu1 %v70_v3  ;;  %v63_v6 = vld [vmem:[#allocation2 + $0xe0] sm:$0xff]  ;;  %v66_v7 = vld [vmem:[#allocation2 + $0xf8] sm:$0xff]  ;;  %v60_v8 = vld [vmem:[#allocation2 + $0xc8] sm:$0xff] }
  0x11   :  { %91 = vmatpush1.msra.mxu0 %v67_v2  ;;  %162 = vmatpush1.msra.mxu1 %v69_v5  ;;  %v65_v9 = vld [vmem:[#allocation2 + $0xf0] sm:$0xff]  ;;  %v59_v10 = vld [vmem:[#allocation2 + $0xc0] sm:$0xff]  ;;  %v62_v11 = vld [vmem:[#allocation2 + $0xd8] sm:$0xff] }
  0x12   :  { %92 = vmatprep.subr.mxu0 %v64_v4  ;;  %163 = vmatprep.subr.mxu1 %v66_v7  ;;  %v56_v12 = vld [vmem:[#allocation2 + $0xa8] sm:$0xff]  ;;  %v61_v13 = vld [vmem:[#allocation2 + $0xd0] sm:$0xff]  ;;  %v58_v14 = vld [vmem:[#allocation2 + $0xb8] sm:$0xff] }
  0x13   :  { %93 = vmatpush1.msra.mxu0 %v63_v6  ;;  %164 = vmatpush1.msra.mxu1 %v65_v9  ;;  %v55_v15 = vld [vmem:[#allocation2 + $0xa0] sm:$0xff]  ;;  %v57_v16 = vld [vmem:[#allocation2 + $0xb0] sm:$0xff]  ;;  %v52_v17 = vld [vmem:[#allocation2 + $0x88] sm:$0xff]  ;;  %v564_v9 = vmov 0  }
  0x14   :  { %94 = vmatprep.subr.mxu0 %v60_v8  ;;  %165 = vmatprep.subr.mxu1 %v62_v11  ;;  %v54_v18 = vld [vmem:[#allocation2 + $0x98] sm:$0xff]  ;;  %v51_v19 = vld [vmem:[#allocation2 + $0x80] sm:$0xff]  ;;  %v53_v20 = vld [vmem:[#allocation2 + $0x90] sm:$0xff] }
  0x15   :  { %95 = vmatpush1.msra.mxu0 %v59_v10  ;;  %166 = vmatpush1.msra.mxu1 %v61_v13  ;;  %v48_v21 = vld [vmem:[#allocation2 + $0x68] sm:$0xff]  ;;  %v50_v22 = vld [vmem:[#allocation2 + $0x78] sm:$0xff]  ;;  %v47_v23 = vld [vmem:[#allocation2 + $0x60] sm:$0xff] }
  0x16   :  { %96 = vmatprep.subr.mxu0 %v56_v12  ;;  %167 = vmatprep.subr.mxu1 %v58_v14  ;;  %v49_v24 = vld [vmem:[#allocation2 + $0x70] sm:$0xff]  ;;  %v44_v25 = vld [vmem:[#allocation2 + $0x48] sm:$0xff]  ;;  %v46_v26 = vld [vmem:[#allocation2 + $0x58] sm:$0xff] }
  0x17   :  { %97 = vmatpush1.msra.mxu0 %v55_v15  ;;  %168 = vmatpush1.msra.mxu1 %v57_v16  ;;  %v43_v27 = vld [vmem:[#allocation2 + $0x40] sm:$0xff]  ;;  %v45_v28 = vld [vmem:[#allocation2 + $0x50] sm:$0xff]  ;;  %v40_v29 = vld [vmem:[#allocation2 + $0x28] sm:$0xff] }
  0x18   :  { %98 = vmatprep.subr.mxu0 %v52_v17  ;;  %169 = vmatprep.subr.mxu1 %v54_v18  ;;  %v42_v30 = vld [vmem:[#allocation2 + $0x38] sm:$0xff]  ;;  %v39_v31 = vld [vmem:[#allocation2 + $0x20] sm:$0xff]  ;;  %v41_v32 = vld [vmem:[#allocation2 + $0x30] sm:$0xff] }
  0x19   :  { %99 = vmatpush1.msra.mxu0 %v51_v19  ;;  %170 = vmatpush1.msra.mxu1 %v53_v20  ;;  %v36_v33 = vld [vmem:[#allocation2 + $0x8] sm:$0xff]  ;;  %v38_v34 = vld [vmem:[#allocation2 + $0x18] sm:$0xff]  ;;  %v35_v35 = vld [vmem:[#allocation2] sm:$0xff] }
  0x1a   :  { %100 = vmatprep.subr.mxu0 %v48_v21  ;;  %171 = vmatprep.subr.mxu1 %v50_v22  ;;  %v37_v36 = vld [vmem:[#allocation2 + $0x10] sm:$0xff]  ;;  %v71_v37 = vld [vmem:[%s684_s1] sm:$0xff]  ;;  %v219_v43 = vld [vmem:[%s685_s2 + $0x8] sm:$0xff] }
  0x1b   :  { %101 = vmatpush1.msra.mxu0 %v47_v23  ;;  %172 = vmatpush1.msra.mxu1 %v49_v24  ;;  %v218_v42 = vld [vmem:[%s685_s2] sm:$0xff] }
  0x1c   :  { %102 = vmatprep.subr.mxu0 %v44_v25  ;;  %173 = vmatprep.subr.mxu1 %v46_v26  ;;  %v453_v8 = vld [vmem:[%s687_s4] sm:$0xff] }
  0x1d   :  { %103 = vmatpush1.msra.mxu0 %v43_v27  ;;  %174 = vmatpush1.msra.mxu1 %v45_v28  ;;  %v423_v26 = vld [vmem:[%s686_s3] sm:$0xff] }
  0x1e   :  { %104 = vmatprep.subr.mxu0 %v40_v29  ;;  %175 = vmatprep.subr.mxu1 %v42_v30  ;;  %v424_v29 = vld [vmem:[%s686_s3 + $0x8] sm:$0xff]  ;;  %s565_s3 = smov [#allocation5]  }
  0x1f   :  { %105 = vmatpush1.msra.mxu0 %v39_v31  ;;  %176 = vmatpush1.msra.mxu1 %v41_v32  ;;  %v454_v32 = vld [vmem:[%s687_s4 + $0x8] sm:$0xff]  ;;  %s486_s4 = sshll.u32 %s565_s3, 4  ;;  %s487_s4 = int_to_ptr.vmem [resolvable:$true] %s486_s4 }
  0x20   :  { %106 = vmatprep.subr.mxu0 %v36_v33  ;;  %177 = vmatprep.subr.mxu1 %v38_v34  ;;  %s536_s11 = scalar_lea.vmem %s487_s4, 1024  ;;  %p541_p6 = scmp.lt.s32.totalorder %s487_s4, %s487_s4 }
  0x21   :  { %107 = vmatpush1.msra.mxu0 %v35_v35  ;;  %178 = vmatpush1.msra.mxu1 %v37_v36  ;;  %p537_p5 = scmp.ne.s32.totalorder %s487_s4, %s536_s11  ;;  %p542_p7 = scmp.lt.s32.totalorder %s536_s11, %s536_s11 }
  0x22   :  { %498 = vmatmul.mubr.msk.f32.vlgmr.msra.gmra.mxu0 %vm72_vm0, %v71_v37  ;;  %499 = vmatmul.mubr.msk.f32.vlgmr.msra.gmra.mxu1 %vm72_vm0, %v71_v37 }
  0x23   :  { %291 = vmatprep.mubr.f32.mxu0 %v563_v0  ;;  %368 = vmatprep.mubr.f32.mxu1 %v563_v0  ;;  %p543_p8 = por %p542_p7, %p541_p6 }
  0x24   :  { %511 = vset.pattern.permute.xlu1 %v564_v9  ;;  %510 = vset.pattern.permute.xlu0 %v564_v9 }
  0x25   :  { %p544_p9 = pnand %p543_p8, %p537_p5 }
  0xe2   :  { %v142_v38 = vpop.f32.mrf.mxu0  ;;  %v213_v39 = vpop.f32.mrf.mxu1 }
  0xe4   :  { %v144_v40 = vpop.f32.mrf.mxu0  ;;  %v215_v41 = vpop.f32.mrf.mxu1 }
  0xe5   :  { %257 = vmatprep.subr.mxu0 %v144_v40  ;;  %334 = vmatprep.subr.mxu1 %v215_v41 }
  0xe6   :  { %258 = vmatpush1.msra.mxu0 %v142_v38  ;;  %335 = vmatpush1.msra.mxu1 %v213_v39 }
  0xe7   :  { %500 = vmatmul.mubr.msk.f32.vlgmr.msra.gmra.mxu0 %vm220_vm1, %v218_v42  ;;  %502 = vmatmul.mubr.msk.f32.vlgmr.msra.gmra.mxu1 %vm220_vm1, %v218_v42 }
  0xe8   :  { %297 = vmatprep.mubr.f32.mxu0 %v563_v0  ;;  %374 = vmatprep.mubr.f32.mxu1 %v563_v0 }
  0xeb   :  { %501 = vmatmul.mubr.msk.f32.gmra.mxu0 %vm220_vm1, %v219_v43  ;;  %503 = vmatmul.mubr.msk.f32.gmra.mxu1 %vm220_vm1, %v219_v43 }
 0x1a7   :  { %v617_v44 = vpop.f32.mrf.mxu0  ;;  %v619_v45 = vpop.f32.mrf.mxu1 }
 0x1a8   :  { %v393_v48 = vmul.f32 %v617_v44, %v617_v44  ;;  %v395_v52 = vmul.f32 %v619_v45, %v619_v45 }
 0x1a9   :  { %v621_v46 = vpop.f32.mrf.mxu0  ;;  %v623_v47 = vpop.f32.mrf.mxu1 }
 0x1aa   :  { %v381_v49 = vadd.f32 %v621_v46, %v617_v44  ;;  %v394_v50 = vmul.f32 %v621_v46, %v621_v46  ;;  %v396_v63 = vmul.f32 %v623_v47, %v623_v47 }
 0x1ab   :  { %v631_v51 = vpop.f32.mrf.mxu0  ;;  %v635_v53 = vpop.f32.mrf.mxu1 }
 0x1ac   :  { %v382_v54 = vadd.f32 %v381_v49, %v619_v45  ;;  %v401_v55 = vadd.f32 %v394_v50, %v393_v48  ;;  %v397_v56 = vmul.f32 %v631_v51, %v631_v51  ;;  %v399_v60 = vmul.f32 %v635_v53, %v635_v53 }
 0x1ad   :  { %v640_v57 = vpop.f32.mrf.mxu0  ;;  %v649_v62 = vpop.f32.mrf.mxu1 }
 0x1ae   :  { %v386_v58 = vadd.f32 %v640_v57, %v631_v51  ;;  %v398_v59 = vmul.f32 %v640_v57, %v640_v57  ;;  %v383_v61 = vadd.f32 %v382_v54, %v623_v47  ;;  %v402_v0 = vadd.f32 %v401_v55, %v395_v52 }
 0x1af   :  { %v400_v4 = vmul.f32 %v649_v62, %v649_v62 }
 0x1b0   :  { %v406_v1 = vadd.f32 %v398_v59, %v397_v56  ;;  %384 = vadd.xlane.f32.xlu0 %v383_v61  ;;  %v387_v2 = vadd.f32 %v386_v58, %v635_v53  ;;  %v403_v3 = vadd.f32 %v402_v0, %v396_v63 }
 0x1b2   :  { %v388_v5 = vadd.f32 %v387_v2, %v649_v62  ;;  %v407_v6 = vadd.f32 %v406_v1, %v399_v60  ;;  %404 = vadd.xlane.f32.xlu1 %v403_v3 }
 0x1b4   :  { %389 = vadd.xlane.f32.xlu0 %v388_v5  ;;  %v408_v7 = vadd.f32 %v407_v6, %v400_v4 }
 0x1b6   :  { %409 = vadd.xlane.f32.xlu1 %v408_v7 }
 0x1c7   :  { %457 = vperm.xlu1 %511, %v453_v8  }
 0x239   :  { %v385_v10 = vpop.xlane.xlu0 %384 }
 0x23a   :  { %v391_v11 = vmul.f32 0.001953125, %v385_v10 }
 0x23b   :  { %v405_v12 = vpop.xlane.xlu1 %404 }
 0x23c   :  { %v413_v13 = vmul.f32 %v391_v11, %v391_v11  ;;  %v411_v14 = vmul.f32 0.001953125, %v405_v12  ;;  %v427_v34 = vsub.f32 %v617_v44, %v391_v11  ;;  %v428_v35 = vsub.f32 %v621_v46, %v391_v11 }
 0x23d   :  { %v390_v15 = vpop.xlane.xlu0 %389  ;;  %v429_v36 = vsub.f32 %v619_v45, %v391_v11  ;;  %v430_v37 = vsub.f32 %v623_v47, %v391_v11 }
 0x23e   :  { %v392_v16 = vmul.f32 0.001953125, %v390_v15  ;;  %v415_v17 = vsub.f32 %v411_v14, %v413_v13 }
 0x23f   :  { %v410_v18 = vpop.xlane.xlu1 %409 }
 0x240   :  { %v414_v19 = vmul.f32 %v392_v16, %v392_v16  ;;  %v417_v20 = vmax.f32 %v415_v17, 0.0  ;;  %v412_v21 = vmul.f32 0.001953125, %v410_v18  ;;  %v431_v44 = vsub.f32 %v631_v51, %v392_v16 }
 0x241   :  { %v432_v45 = vsub.f32 %v640_v57, %v392_v16  ;;  %v433_v46 = vsub.f32 %v635_v53, %v392_v16  ;;  %v434_v47 = vsub.f32 %v649_v62, %v392_v16 }
 0x242   :  { %v419_v22 = vadd.f32 1e-05, %v417_v20  ;;  %v416_v23 = vsub.f32 %v412_v21, %v414_v19 }
 0x243   :  { %v458_v33 = vpop.permute.xlu1 %457 }
 0x244   :  { %512 = vrsqrt.f32 %v419_v22  ;;  %v418_v24 = vmax.f32 %v416_v23, 0.0 }
 0x246   :  { %v420_v25 = vadd.f32 1e-05, %v418_v24 }
 0x248   :  { %514 = vrsqrt.f32 %v420_v25 }
 0x251   :  { %v513_v27 = vpop.eup %512 }
 0x252   :  { %v425_v28 = vmul.f32 %v513_v27, %v423_v26 }
 0x254   :  { %437 = vperm.xlu0 %510, %v425_v28  }
 0x255   :  { %v515_v30 = vpop.eup %514 }
 0x256   :  { %v426_v31 = vmul.f32 %v515_v30, %v424_v29 }
 0x258   :  { %442 = vperm.xlu1 %511, %v426_v31  }
 0x25c   :  { %462 = vperm.xlu1 %511, %v454_v32  }
 0x2cf   :  { %v438_v38 = vpop.permute.xlu0 %437 }
 0x2d0   :  { %v445_v39 = vmul.f32 %v438_v38, %v427_v34  ;;  %v446_v40 = vmul.f32 %v438_v38, %v428_v35  ;;  %v447_v41 = vmul.f32 %v438_v38, %v429_v36  ;;  %v448_v42 = vmul.f32 %v438_v38, %v430_v37 }
 0x2d2   :  { %v465_v43 = vadd.f32 %v458_v33, %v445_v39  ;;  %v466_v48 = vadd.f32 %v458_v33, %v446_v40  ;;  %v467_v49 = vadd.f32 %v458_v33, %v447_v41  ;;  %v468_v50 = vadd.f32 %v458_v33, %v448_v42 }
 0x2d3   :  { %v443_v52 = vpop.permute.xlu1 %442 }
 0x2d4   :  { %473 = vst [vmem:[#allocation5] sm:$0xff] %v465_v43  ;;  %474 = vst [vmem:[#allocation5 + $0x8] sm:$0xff] %v466_v48  ;;  %v449_v54 = vmul.f32 %v443_v52, %v431_v44  ;;  %v450_v55 = vmul.f32 %v443_v52, %v432_v45  ;;  %v451_v56 = vmul.f32 %v443_v52, %v433_v46 }
 0x2d5   :  { %475 = vst [vmem:[#allocation5 + $0x10] sm:$0xff] %v467_v49  ;;  %476 = vst [vmem:[#allocation5 + $0x18] sm:$0xff] %v468_v50  ;;  %v452_v58 = vmul.f32 %v443_v52, %v434_v47 }
 0x2d7   :  { %v463_v59 = vpop.permute.xlu1 %462 }
 0x2d8   :  { %v469_v60 = vadd.f32 %v463_v59, %v449_v54  ;;  %v470_v61 = vadd.f32 %v463_v59, %v450_v55  ;;  %v471_v63 = vadd.f32 %v463_v59, %v451_v56  ;;  %v472_v0 = vadd.f32 %v463_v59, %v452_v58 }
 0x2da   :  { %477 = vst [vmem:[#allocation5 + $0x20] sm:$0xff] %v469_v60  ;;  %478 = vst [vmem:[#allocation5 + $0x28] sm:$0xff] %v470_v61 }
 0x2db   :  { %479 = vst [vmem:[#allocation5 + $0x30] sm:$0xff] %v471_v63  ;;  %480 = vst [vmem:[#allocation5 + $0x38] sm:$0xff] %v472_v0 }
 0x2dc   :  { %547 = shalt.err (!%p544_p9)
}
 0x2dd   :  { %492 = dma.vmem_to_hbm [thread:$0]  %s487_s4, 1024, %s688_s5, [#allocation4], %s561_s21, %s561_s21, %s562_s22  }
 0x2de   :  { %558 = dma.done.wait [#allocation4], 1024  }
 0x2df   :  { %559 = vsyncadd [#allocation4], 4294966272 }
 0x2e0   :  { %496 = vsyncpa [#allocation3], 1 }
 0x2e1   :  { %497 = vsyncpa [#allocation4], 1 }

</bundles_post_ra>
